<compile_context>
chip_gen: v7x
topology: tpu7x:2x2x1
jax: 0.10.0
libtpu: 0.0.40
codegen_flags: <defaults>
</compile_context>

<pallas_src>
import functools
import math

import jax
import jax.numpy as jnp
from jax.experimental import pallas as pl
from jax.experimental.pallas import tpu as pltpu


# --------------------------------------------------------------------------- #
# Kernel bodies
# --------------------------------------------------------------------------- #
def _attend_subblock(feat_ref, hm_ref, g0, g, *, act, scale, op_dtype):
    """Attention for `g` consecutive batch elements of the current block.

    Packs the `g` elements into a single MXU matmul
        (g*J, HW) x (g*C, HW)^T -> (g*J, g*C)
    so the K=HW weight load is amortized over g*J streamed rows and the MXU N
    dimension is filled to ~g*C lanes (vs. J=8 rows / C lanes per weight load
    for a per-batch einsum).  The off-diagonal (cross-batch) blocks of the
    packed product are garbage and are sliced away exactly.

    Returns a list of `g` float32 (J, C) attention blocks.
    """
    J, HW = hm_ref.shape[1], hm_ref.shape[2]
    C = feat_ref.shape[1]

    # Softmax/sigmoid over the spatial (lane) axis, computed in f32, only for
    # this sub-block so f32 temporaries do not scale with TB.
    hm = hm_ref[pl.ds(g0, g)].astype(jnp.float32)                  # (g, J, HW)
    if scale is not None:
        hm = hm * scale
    if act == "softmax":
        m = jnp.max(hm, axis=-1, keepdims=True)
        e = jnp.exp(hm - m)
        p = e * pl.reciprocal(jnp.sum(e, axis=-1, keepdims=True), approx=False)
    else:                                                          # "sigmoid"
        p = jax.nn.sigmoid(hm)

    # Layout-trivial merges of the leading (batch) dim; both operands contract
    # on the last dim, so no transpose/relayout before the MXU.
    p2d = p.astype(op_dtype).reshape(g * J, HW)
    f2d = feat_ref[pl.ds(g0, g)].astype(op_dtype).reshape(g * C, HW)
    big = jax.lax.dot_general(                                     # (g*J, g*C)
        p2d, f2d,
        dimension_numbers=(((1,), (1,)), ((), ())),
        preferred_element_type=jnp.float32)
    # Exact diagonal-block extraction (off-diagonal blocks are cross-batch
    # garbage and must not leak into the output).
    return [big[gi * J:(gi + 1) * J, gi * C:(gi + 1) * C] for gi in range(g)]


def _kpt_attn_kernel(feat_ref, hm_ref, out_ref, *, act, scale, group, op_dtype):
    """Block of TB batch elements, attention only (use_conv=False)."""
    TB = hm_ref.shape[0]
    for g0 in range(0, TB, group):
        g = min(group, TB - g0)
        blocks = _attend_subblock(feat_ref, hm_ref, g0, g,
                                  act=act, scale=scale, op_dtype=op_dtype)
        for gi, blk in enumerate(blocks):
            out_ref[g0 + gi] = blk.astype(out_ref.dtype)


def _kpt_attn_conv_kernel(feat_ref, hm_ref, w_ref, b_ref, out_ref, *,
                          act, scale, group, op_dtype):
    """Block of TB batch elements, attention + 1x1 Conv1d (use_conv=True)."""
    TB, J, _ = hm_ref.shape
    C_out = w_ref.shape[0]
    blocks = []
    for g0 in range(0, TB, group):
        g = min(group, TB - g0)
        blocks.extend(_attend_subblock(feat_ref, hm_ref, g0, g,
                                       act=act, scale=scale, op_dtype=op_dtype))
    # (TB*J, C_in) f32 -- J=8 blocks are sublane-aligned so the concat is cheap.
    att = blocks[0] if len(blocks) == 1 else jnp.concatenate(blocks, axis=0)
    w = w_ref[...].astype(op_dtype)                                # (C_out, C_in)
    out2d = jax.lax.dot_general(                                   # (TB*J, C_out)
        att.astype(op_dtype), w,
        dimension_numbers=(((1,), (1,)), ((), ())),
        preferred_element_type=jnp.float32)
    out2d = out2d + b_ref[...].astype(jnp.float32)                 # (1, C_out) lane-dense bias
    out_ref[...] = out2d.reshape(TB, J, C_out).astype(out_ref.dtype)


# --------------------------------------------------------------------------- #
# Hardware-aware tiling
# --------------------------------------------------------------------------- #
def _chip_hints():
    """(two TensorCores per kernel invocation?, MXU N width) from device kind."""
    kind = ""
    try:
        kind = jax.devices()[0].device_kind.lower()
    except Exception:
        pass
    # Chips where one pallas_call spans two TensorCores (megacore / v7x):
    # give them an even number of grid steps so both cores get equal work.
    two_cores = any(tag in kind for tag in ("v4", "v5p", "7"))
    # v5e has a 128-wide MXU; v6e/v7x are 256 wide.
    mxu_n = 128 if ("v5e" in kind or "v5 lite" in kind or "v5lite" in kind) else 256
    return two_cores, mxu_n


def _vmem_limit_bytes():
    """~0.75x of physical per-core VMEM (96 MiB on v5e/v6e, 48 MiB on v7x)."""
    cap = None
    try:
        cap = getattr(pltpu.get_tpu_info(), "vmem_capacity_bytes", None)
    except Exception:
        cap = None
    if not cap:
        cap = 64 * 1024 * 1024          # conservative fallback (v7x per-core VMEM)
    return int(cap) * 3 // 4


def _per_batch_vmem_bytes(C, J, HW, C_out, in_item, out_item):
    return (2 * (C + J) * HW * in_item      # double-buffered feature + heatmap tiles
            + 2 * J * C_out * out_item      # double-buffered output tile
            + J * max(C, C_out) * 4)        # f32 attention rows (kept live for the conv matmul)


def _fixed_vmem_bytes(C, J, HW, C_out, group, in_item, op_item, use_conv):
    g = group
    fixed = 2 * g * (3 * J * HW * 4 + J * HW * op_item)   # f32 softmax temps + cast probs (x2 slack)
    if op_item != in_item:
        fixed += 2 * g * C * HW * op_item                 # feature operand cast for one sub-block
    fixed += 2 * (g * J) * (g * C) * 4                    # packed matmul product
    if use_conv:
        fixed += 2 * (C_out * C * in_item + C_out * 4)    # conv weight + bias (double-buffered)
    fixed += 2 * 1024 * 1024                              # compiler-internal scratch headroom
    return fixed


def _choose_grid(B, per_b, budget, two_cores):
    """Batch tile TB and grid-step count (B is padded to TB*steps by caller)."""
    tb = max(1, min(B, budget // max(per_b, 1)))
    steps = -(-B // tb)                       # ceil
    if two_cores and B >= 2:
        # Balance v7x / megacore: even number of grid steps, at least 2.
        if steps < 2:
            steps = 2
        elif steps % 2:
            steps += 1
        tb = -(-B // steps)
    return tb, steps


# --------------------------------------------------------------------------- #
# Wrapper
# --------------------------------------------------------------------------- #
def keypoint_attention(features, heatmaps, conv_w=None, conv_b=None,
                       act="softmax", use_scale=False, mxu_dtype=None):
    """Pallas implementation of KeypointAttention.forward.

    features : (B, C, H, W)
    heatmaps : (B, J, H, W)
    conv_w   : optional (C_out, C_in) -- the 1x1 Conv1d weight (use_conv=True)
    conv_b   : optional (C_out,)      -- the 1x1 Conv1d bias
    mxu_dtype: optional matmul-operand dtype (e.g. jnp.bfloat16 for f32 inputs
               -> 2-4x MXU throughput, ~1e-3 rel. error).  Accumulation is f32.
    returns  : (B, C_out_or_C, J)   (matches the torch output layout)
    """
    B, C, H, W = features.shape
    Bh, J, Hh, Wh = heatmaps.shape
    assert (B, H, W) == (Bh, Hh, Wh)
    if act not in ("softmax", "sigmoid"):
        raise ValueError(f"unsupported act: {act!r}")
    HW = H * W
    scale = (1.0 / math.sqrt(HW)) if use_scale else None    # folded into the kernel

    feat2d = features.reshape(B, C, HW)
    hm2d = heatmaps.reshape(B, J, HW)
    use_conv = conv_w is not None
    C_out = C if not use_conv else conv_w.shape[0]

    op_dtype = jnp.dtype(mxu_dtype) if mxu_dtype is not None else jnp.dtype(features.dtype)
    in_item = jnp.dtype(features.dtype).itemsize
    op_item = op_dtype.itemsize

    # Generation-aware sizing.
    two_cores, mxu_n = _chip_hints()
    vmem_limit = _vmem_limit_bytes()
    group_target = max(1, min(mxu_n // max(C, 1), 8))       # pack G so G*C fills the MXU N dim
    per_b = _per_batch_vmem_bytes(C, J, HW, C_out, in_item, in_item)
    fixed = _fixed_vmem_bytes(C, J, HW, C_out, group_target, in_item, op_item, use_conv)
    budget = max(per_b, vmem_limit - fixed)
    TB, steps = _choose_grid(B, per_b, budget, two_cores)
    group = max(1, min(group_target, TB))

    # Pad B up to TB*steps instead of shrinking TB to a divisor of B (keeps
    # tiles / DMAs large for awkward batch sizes); padded rows dropped below.
    B_pad = TB * steps
    if B_pad != B:
        feat2d = jnp.pad(feat2d, ((0, B_pad - B), (0, 0), (0, 0)))
        hm2d = jnp.pad(hm2d, ((0, B_pad - B), (0, 0), (0, 0)))

    compiler_params = pltpu.CompilerParams(
        dimension_semantics=("parallel",),
        vmem_limit_bytes=vmem_limit,
    )
    # Kernel writes the lane-dense (B, J, C_out) layout; wrapper transposes back.
    out_shape = jax.ShapeDtypeStruct((B_pad, J, C_out), features.dtype)
    out_spec = pl.BlockSpec((TB, J, C_out), lambda b: (b, 0, 0))

    if not use_conv:
        kernel = functools.partial(_kpt_attn_kernel, act=act, scale=scale,
                                   group=group, op_dtype=op_dtype)
        grid_spec = pltpu.PrefetchScalarGridSpec(
            num_scalar_prefetch=0, grid=(steps,),
            in_specs=[pl.BlockSpec((TB, C, HW), lambda b: (b, 0, 0)),
                      pl.BlockSpec((TB, J, HW), lambda b: (b, 0, 0))],
            out_specs=out_spec)
        out_bjc = pl.pallas_call(kernel, out_shape=out_shape, grid_spec=grid_spec,
                                 compiler_params=compiler_params)(feat2d, hm2d)
    else:
        out_c, in_c = conv_w.shape
        assert in_c == C
        b2d = conv_b.reshape(1, out_c)                       # lane-dense bias
        kernel = functools.partial(_kpt_attn_conv_kernel, act=act, scale=scale,
                                   group=group, op_dtype=op_dtype)
        grid_spec = pltpu.PrefetchScalarGridSpec(
            num_scalar_prefetch=0, grid=(steps,),
            in_specs=[pl.BlockSpec((TB, C, HW), lambda b: (b, 0, 0)),
                      pl.BlockSpec((TB, J, HW), lambda b: (b, 0, 0)),
                      pl.BlockSpec((out_c, in_c), lambda b: (0, 0)),
                      pl.BlockSpec((1, out_c), lambda b: (0, 0))],
            out_specs=out_spec)
        out_bjc = pl.pallas_call(kernel, out_shape=out_shape, grid_spec=grid_spec,
                                 compiler_params=compiler_params)(feat2d, hm2d, conv_w, b2d)

    if B_pad != B:
        out_bjc = out_bjc[:B]
    # Torch layout: attended_features.transpose(2, 1) -> (B, C_out, J).
    return jnp.swapaxes(out_bjc, 1, 2)


# --------------------------------------------------------------------------- #
# Pure-JAX reference + self-test
# --------------------------------------------------------------------------- #
def _reference(features, heatmaps, conv_w=None, conv_b=None,
               act="softmax", use_scale=False):
    B, C, H, W = features.shape
    J = heatmaps.shape[1]
    hm = heatmaps.reshape(B, J, H * W).astype(jnp.float32)
    if use_scale:
        hm = hm * (1.0 / math.sqrt(H * W))
    p = jax.nn.softmax(hm, axis=-1) if act == "softmax" else jax.nn.sigmoid(hm)
    feat = features.reshape(B, C, H * W).astype(jnp.float32)
    att = jnp.einsum("bjl,bcl->bcj", p, feat)                # (B, C, J)
    if conv_w is not None:
        att = jnp.einsum("oc,bcj->boj", conv_w.astype(jnp.float32), att) \
              + conv_b.astype(jnp.float32)[None, :, None]
    return att.astype(features.dtype)


if __name__ == "__main__":
    # Small shapes consistent with the module (shape_cam branch uses 64 channels).
    # B=5 exercises batch padding and the remainder path of the G=4 packing.
    B, C, H, W = 5, 64, 16, 16
    J = 8  # num_joints

    key = jax.random.PRNGKey(0)
    k1, k2, k3, k4 = jax.random.split(key, 4)
    features = jax.random.normal(k1, (B, C, H, W), dtype=jnp.float32)
    heatmaps = jax.random.normal(k2, (B, J, H, W), dtype=jnp.float32)

    # --- default module config: use_conv=False, softmax ---
    out = jax.block_until_ready(keypoint_attention(features, heatmaps))
    ref = _reference(features, heatmaps)
    assert out.shape == (B, C, J)
    assert jnp.allclose(out, ref, atol=1e-4, rtol=1e-4)

    # --- use_scale=True (scale folded into the kernel) ---
    out_s = jax.block_until_ready(
        keypoint_attention(features, heatmaps, use_scale=True))
    ref_s = _reference(features, heatmaps, use_scale=True)
    assert jnp.allclose(out_s, ref_s, atol=1e-4, rtol=1e-4)

    # --- act='sigmoid' path ---
    out_g = jax.block_until_ready(
        keypoint_attention(features, heatmaps, act="sigmoid"))
    ref_g = _reference(features, heatmaps, act="sigmoid")
    assert jnp.allclose(out_g, ref_g, atol=1e-4, rtol=1e-4)

    # --- use_conv=True path: deterministic synthetic 1x1 Conv1d params ---
    conv_w = 0.02 * jax.random.normal(k3, (C, C), dtype=jnp.float32)
    conv_b = 0.01 * jax.random.normal(k4, (C,), dtype=jnp.float32)
    out_c = jax.block_until_ready(
        keypoint_attention(features, heatmaps, conv_w=conv_w, conv_b=conv_b))
    ref_c = _reference(features, heatmaps, conv_w, conv_b)
    assert out_c.shape == (B, C, J)
    assert jnp.allclose(out_c, ref_c, atol=1e-4, rtol=1e-4)

    # --- optional bf16 MXU operands (f32 accumulation): looser tolerance ---
    out_h = jax.block_until_ready(
        keypoint_attention(features, heatmaps, mxu_dtype=jnp.bfloat16))
    assert jnp.allclose(out_h, ref, atol=3e-2, rtol=3e-2)

    print("KERNEL_OK")
</pallas_src>

<mosaic_0001>
module attributes {stable_mosaic.version = 11 : i64} {
  func.func @_kpt_attn_kernel(%arg0: i32, %arg1: memref<5x64x256xf32, #tpu.memory_space<vmem>>, %arg2: memref<5x8x256xf32, #tpu.memory_space<vmem>>, %arg3: memref<5x8x64xf32, #tpu.memory_space<vmem>>) attributes {dimension_semantics = [#tpu.dimension_semantics<parallel>], iteration_bounds = array<i64: 1>, scalar_prefetch = 0 : i64, scratch_operands = 0 : i64, tpu.core_type = #tpu.core_type<tc>, window_params = [{transform_indices = @transform_0, window_bounds = array<i64: 5, 64, 256>}, {transform_indices = @transform_1, window_bounds = array<i64: 5, 8, 256>}, {transform_indices = @transform_2, window_bounds = array<i64: 5, 8, 64>}]} {
    %c0 = arith.constant 0 : index
    %c0_0 = arith.constant 0 : index
    %c0_1 = arith.constant 0 : index
    %0 = vector.load %arg2[%c0, %c0_0, %c0_1] : memref<5x8x256xf32, #tpu.memory_space<vmem>>, vector<4x8x256xf32>
    %cst = arith.constant dense<0xFF800000> : vector<4x8xf32>
    %1 = vector.multi_reduction <maximumf>, %0, %cst [2] : vector<4x8x256xf32> to vector<4x8xf32>
    %2 = vector.shape_cast %1 : vector<4x8xf32> to vector<4x8x1xf32>
    %3 = vector.broadcast %2 : vector<4x8x1xf32> to vector<4x8x256xf32>
    %4 = arith.subf %0, %3 : vector<4x8x256xf32>
    %5 = math.exp %4 : vector<4x8x256xf32>
    %cst_2 = arith.constant dense<0.000000e+00> : vector<4x8xf32>
    %6 = vector.multi_reduction <add>, %5, %cst_2 [2] : vector<4x8x256xf32> to vector<4x8xf32>
    %7 = vector.shape_cast %6 : vector<4x8xf32> to vector<4x8x1xf32>
    %8 = tpu.reciprocal %7 : vector<4x8x1xf32> -> vector<4x8x1xf32>
    %9 = vector.broadcast %8 : vector<4x8x1xf32> to vector<4x8x256xf32>
    %10 = arith.mulf %5, %9 : vector<4x8x256xf32>
    %11 = vector.shape_cast %10 : vector<4x8x256xf32> to vector<32x256xf32>
    %c0_3 = arith.constant 0 : index
    %c0_4 = arith.constant 0 : index
    %c0_5 = arith.constant 0 : index
    %12 = vector.load %arg1[%c0_3, %c0_4, %c0_5] : memref<5x64x256xf32, #tpu.memory_space<vmem>>, vector<4x64x256xf32>
    %13 = vector.shape_cast %12 : vector<4x64x256xf32> to vector<256x256xf32>
    %cst_6 = arith.constant dense<0.000000e+00> : vector<32x256xf32>
    %14 = tpu.matmul %11, %13, %cst_6 {dimension_numbers = #tpu.dot_dimension_numbers<[1], [1], [0], [0], [0, 0, 1, 0], [], []>} : vector<32x256xf32>, vector<256x256xf32>, vector<32x256xf32> -> vector<32x256xf32>
    %15 = vector.extract_strided_slice %14 {offsets = [0, 0], sizes = [8, 64], strides = [1, 1]} : vector<32x256xf32> to vector<8x64xf32>
    %16 = vector.extract_strided_slice %14 {offsets = [8, 64], sizes = [8, 64], strides = [1, 1]} : vector<32x256xf32> to vector<8x64xf32>
    %17 = vector.extract_strided_slice %14 {offsets = [16, 128], sizes = [8, 64], strides = [1, 1]} : vector<32x256xf32> to vector<8x64xf32>
    %18 = vector.extract_strided_slice %14 {offsets = [24, 192], sizes = [8, 64], strides = [1, 1]} : vector<32x256xf32> to vector<8x64xf32>
    %c0_7 = arith.constant 0 : index
    %c0_8 = arith.constant 0 : index
    %c0_9 = arith.constant 0 : index
    %19 = vector.load %arg3[%c0_7, %c0_8, %c0_9] : memref<5x8x64xf32, #tpu.memory_space<vmem>>, vector<1x8x64xf32>
    %20 = vector.shape_cast %19 : vector<1x8x64xf32> to vector<8x64xf32>
    %21 = vector.shape_cast %15 : vector<8x64xf32> to vector<1x8x64xf32>
    tpu.vector_store %arg3[%c0_7, %c0_8, %c0_9], %21 {strides = array<i32>} : memref<5x8x64xf32, #tpu.memory_space<vmem>>, vector<1x8x64xf32>,
    %c1 = arith.constant 1 : index
    %c0_10 = arith.constant 0 : index
    %c0_11 = arith.constant 0 : index
    %22 = vector.load %arg3[%c1, %c0_10, %c0_11] : memref<5x8x64xf32, #tpu.memory_space<vmem>>, vector<1x8x64xf32>
    %23 = vector.shape_cast %22 : vector<1x8x64xf32> to vector<8x64xf32>
    %24 = vector.shape_cast %16 : vector<8x64xf32> to vector<1x8x64xf32>
    tpu.vector_store %arg3[%c1, %c0_10, %c0_11], %24 {strides = array<i32>} : memref<5x8x64xf32, #tpu.memory_space<vmem>>, vector<1x8x64xf32>,
    %c2 = arith.constant 2 : index
    %c0_12 = arith.constant 0 : index
    %c0_13 = arith.constant 0 : index
    %25 = vector.load %arg3[%c2, %c0_12, %c0_13] : memref<5x8x64xf32, #tpu.memory_space<vmem>>, vector<1x8x64xf32>
    %26 = vector.shape_cast %25 : vector<1x8x64xf32> to vector<8x64xf32>
    %27 = vector.shape_cast %17 : vector<8x64xf32> to vector<1x8x64xf32>
    tpu.vector_store %arg3[%c2, %c0_12, %c0_13], %27 {strides = array<i32>} : memref<5x8x64xf32, #tpu.memory_space<vmem>>, vector<1x8x64xf32>,
    %c3 = arith.constant 3 : index
    %c0_14 = arith.constant 0 : index
    %c0_15 = arith.constant 0 : index
    %28 = vector.load %arg3[%c3, %c0_14, %c0_15] : memref<5x8x64xf32, #tpu.memory_space<vmem>>, vector<1x8x64xf32>
    %29 = vector.shape_cast %28 : vector<1x8x64xf32> to vector<8x64xf32>
    %30 = vector.shape_cast %18 : vector<8x64xf32> to vector<1x8x64xf32>
    tpu.vector_store %arg3[%c3, %c0_14, %c0_15], %30 {strides = array<i32>} : memref<5x8x64xf32, #tpu.memory_space<vmem>>, vector<1x8x64xf32>,
    %c4 = arith.constant 4 : index
    %c0_16 = arith.constant 0 : index
    %c0_17 = arith.constant 0 : index
    %31 = vector.load %arg2[%c4, %c0_16, %c0_17] : memref<5x8x256xf32, #tpu.memory_space<vmem>>, vector<1x8x256xf32>
    %cst_18 = arith.constant dense<0xFF800000> : vector<1x8xf32>
    %32 = vector.multi_reduction <maximumf>, %31, %cst_18 [2] : vector<1x8x256xf32> to vector<1x8xf32>
    %33 = vector.shape_cast %32 : vector<1x8xf32> to vector<1x8x1xf32>
    %34 = vector.broadcast %33 : vector<1x8x1xf32> to vector<1x8x256xf32>
    %35 = arith.subf %31, %34 : vector<1x8x256xf32>
    %36 = math.exp %35 : vector<1x8x256xf32>
    %cst_19 = arith.constant dense<0.000000e+00> : vector<1x8xf32>
    %37 = vector.multi_reduction <add>, %36, %cst_19 [2] : vector<1x8x256xf32> to vector<1x8xf32>
    %38 = vector.shape_cast %37 : vector<1x8xf32> to vector<1x8x1xf32>
    %39 = tpu.reciprocal %38 : vector<1x8x1xf32> -> vector<1x8x1xf32>
    %40 = vector.broadcast %39 : vector<1x8x1xf32> to vector<1x8x256xf32>
    %41 = arith.mulf %36, %40 : vector<1x8x256xf32>
    %42 = vector.shape_cast %41 : vector<1x8x256xf32> to vector<8x256xf32>
    %c4_20 = arith.constant 4 : index
    %c0_21 = arith.constant 0 : index
    %c0_22 = arith.constant 0 : index
    %43 = vector.load %arg1[%c4_20, %c0_21, %c0_22] : memref<5x64x256xf32, #tpu.memory_space<vmem>>, vector<1x64x256xf32>
    %44 = vector.shape_cast %43 : vector<1x64x256xf32> to vector<64x256xf32>
    %cst_23 = arith.constant dense<0.000000e+00> : vector<8x64xf32>
    %45 = tpu.matmul %42, %44, %cst_23 {dimension_numbers = #tpu.dot_dimension_numbers<[1], [1], [0], [0], [0, 0, 1, 0], [], []>} : vector<8x256xf32>, vector<64x256xf32>, vector<8x64xf32> -> vector<8x64xf32>
    %c4_24 = arith.constant 4 : index
    %c0_25 = arith.constant 0 : index
    %c0_26 = arith.constant 0 : index
    %46 = vector.load %arg3[%c4_24, %c0_25, %c0_26] : memref<5x8x64xf32, #tpu.memory_space<vmem>>, vector<1x8x64xf32>
    %47 = vector.shape_cast %46 : vector<1x8x64xf32> to vector<8x64xf32>
    %48 = vector.shape_cast %45 : vector<8x64xf32> to vector<1x8x64xf32>
    tpu.vector_store %arg3[%c4_24, %c0_25, %c0_26], %48 {strides = array<i32>} : memref<5x8x64xf32, #tpu.memory_space<vmem>>, vector<1x8x64xf32>,
    return
  }
  func.func @transform_0(%arg0: i32) -> (i32, i32, i32) {
    %c0_i32 = arith.constant 0 : i32
    %c0_i32_0 = arith.constant 0 : i32
    %c0_i32_1 = arith.constant 0 : i32
    return %arg0, %c0_i32, %c0_i32_0 : i32, i32, i32
  }
  func.func @transform_1(%arg0: i32) -> (i32, i32, i32) {
    %c0_i32 = arith.constant 0 : i32
    %c0_i32_0 = arith.constant 0 : i32
    %c0_i32_1 = arith.constant 0 : i32
    return %arg0, %c0_i32, %c0_i32_0 : i32, i32, i32
  }
  func.func @transform_2(%arg0: i32) -> (i32, i32, i32) {
    %c0_i32 = arith.constant 0 : i32
    %c0_i32_0 = arith.constant 0 : i32
    %c0_i32_1 = arith.constant 0 : i32
    return %arg0, %c0_i32, %c0_i32_0 : i32, i32, i32
  }
}

</mosaic_0001>

<bundles_post_ra>
// kernel: tpu_custom_call.1
= control target key start
LH: loop header
LB: loop body
LE: loop exit
PB: predicated region body
PF: predicated region fallthrough
CT: control target
= control target key end

     0   :  { %7 = vsyncpa [#allocation3], 0  ;;  %s704_s0 = inlined_call_operand.hbm [shape: f32[5,64,256], index: 0, kind: input, shape index: {}]   ;;  %s705_s1 = inlined_call_operand.hbm [shape: f32[5,8,256], index: 1, kind: input, shape index: {}]   ;;  %s706_s2 = inlined_call_operand.hbm [shape: f32[5,8,64], index: 2, kind: output, shape index: {}]  }
   0x1   :  { %8 = vsyncpa [#allocation6], 0 }
   0x2   :  { %9 = vsyncpa [#allocation4], 0  ;;  %s588_s9 = smov [#allocation2]   ;;  %s516_s13 = scalar_lea.hbm %s704_s0, 10240 }
   0x3   :  { %s15_s10 = sshll.u32 %s588_s9, 4  ;;  %p517_p0 = scmp.ne.s32.totalorder %s704_s0, %s516_s13  ;;  %s16_s10 = int_to_ptr.vmem [resolvable:$true] %s15_s10 }
   0x4   :  { %p520_p1 = scmp.lt.u32.totalorder %s516_s13, %s704_s0 }
   0x6   :  { %p522_p2 = pnand %p520_p1, %p517_p0 }
   0x8   :  { %525 = shalt.err (!%p522_p2)
}
   0x9   :  { %s526_s18 = scalar_lea.vmem %s16_s10, 10240  ;;  %p531_p4 = scmp.lt.s32.totalorder %s16_s10, %s16_s10 }
   0xa   :  { %p527_p3 = scmp.ne.s32.totalorder %s16_s10, %s526_s18  ;;  %p532_p5 = scmp.lt.s32.totalorder %s526_s18, %s526_s18 }
   0xc   :  { %p533_p6 = por %p532_p5, %p531_p4 }
   0xe   :  { %p534_p7 = pnand %p533_p6, %p527_p3 }
  0x10   :  { %537 = shalt.err (!%p534_p7)
}
  0x11   :  { %s589_s19 = smov 256   ;;  %s590_s20 = smov 16  }
  0x12   :  { %21 = dma.hbm_to_vmem [thread:$0]  %s704_s0, 10240, %s16_s10, [#allocation3], %s589_s19, %s589_s19, %s590_s20  }
  0x13   :  { %s591_s23 = smov [#allocation5]   ;;  %s538_s27 = scalar_lea.hbm %s705_s1, 1280 }
  0x14   :  { %s27_s24 = sshll.u32 %s591_s23, 4  ;;  %p539_p8 = scmp.ne.s32.totalorder %s705_s1, %s538_s27  ;;  %s28_s24 = int_to_ptr.vmem [resolvable:$true] %s27_s24 }
  0x15   :  { %p542_p9 = scmp.lt.u32.totalorder %s538_s27, %s705_s1 }
  0x17   :  { %p544_p10 = pnand %p542_p9, %p539_p8 }
  0x19   :  { %547 = shalt.err (!%p544_p10)
}
  0x1a   :  { %s548_s4 = scalar_lea.vmem %s28_s24, 1280  ;;  %p553_p12 = scmp.lt.s32.totalorder %s28_s24, %s28_s24 }
  0x1b   :  { %p549_p11 = scmp.ne.s32.totalorder %s28_s24, %s548_s4  ;;  %p554_p13 = scmp.lt.s32.totalorder %s548_s4, %s548_s4 }
  0x1d   :  { %p555_p0 = por %p554_p13, %p553_p12 }
  0x1f   :  { %p556_p1 = pnand %p555_p0, %p549_p11 }
  0x21   :  { %559 = shalt.err (!%p556_p1)
}
  0x22   :  { %33 = dma.hbm_to_vmem [thread:$0]  %s705_s1, 1280, %s28_s24, [#allocation6], %s589_s19, %s589_s19, %s590_s20  }
  0x23   :  { %582 = dma.done.wait [#allocation3], 10240  }
  0x24   :  { %583 = vsyncadd [#allocation3], 4294957056 }
  0x25   :  { %584 = dma.done.wait [#allocation6], 1280  }
  0x26   :  { %585 = vsyncadd [#allocation6], 4294966016  ;;  %v635_v0 = vld [vmem:[#allocation5] sm:$0xff]  ;;  %v637_v1 = vld [vmem:[#allocation5 + $0x8] sm:$0xff]  ;;  %vm257_vm0 = vcmask 523264   ;;  %s592_s1 = smov 64  }
  0x27   :  { %v639_v2 = vld [vmem:[#allocation5 + $0x20] sm:$0xff]  ;;  %v48_v3 = vmax.f32 %v635_v0, %v637_v1  ;;  %v643_v4 = vld [vmem:[#allocation5 + $0x28] sm:$0xff]  ;;  %v645_v5 = vld [vmem:[#allocation5 + $0x10] sm:$0xff]  ;;  %s593_s6 = smov [#allocation7]  }
  0x28   :  { %v647_v6 = vld [vmem:[#allocation5 + $0x18] sm:$0xff]  ;;  %v54_v7 = vmax.f32 %v639_v2, %v643_v4  ;;  %v651_v8 = vld [vmem:[#allocation5 + $0x30] sm:$0xff]  ;;  %v659_v12 = vld [vmem:[#allocation5 + $0x40] sm:$0xff]  ;;  %s385_s7 = sshll.u32 %s593_s6, 4  ;;  %s386_s7 = int_to_ptr.vmem [resolvable:$true] %s385_s7 }
  0x29   :  { %v653_v9 = vld [vmem:[#allocation5 + $0x38] sm:$0xff]  ;;  %49 = vmax.xlane.f32.xlu0 %v48_v3  ;;  %v51_v10 = vmax.f32 %v645_v5, %v647_v6  ;;  %v661_v13 = vld [vmem:[#allocation5 + $0x48] sm:$0xff]  ;;  %v108_v17 = vld [vmem:[#allocation2] sm:$0xff]  ;;  %s560_s8 = scalar_lea.vmem %s386_s7, 640  ;;  %p565_p3 = scmp.lt.s32.totalorder %s386_s7, %s386_s7 }
  0x2a   :  { %55 = vmax.xlane.f32.xlu1 %v54_v7  ;;  %v57_v11 = vmax.f32 %v651_v8, %v653_v9  ;;  %v276_v14 = vmax.f32 %v659_v12, %v661_v13  ;;  %v109_v15 = vld [vmem:[#allocation2 + $0x8] sm:$0xff]  ;;  %v111_v16 = vld [vmem:[#allocation2 + $0x18] sm:$0xff]  ;;  %v110_v19 = vld [vmem:[#allocation2 + $0x10] sm:$0xff]  ;;  %p561_p2 = scmp.ne.s32.totalorder %s386_s7, %s560_s8  ;;  %p566_p4 = scmp.lt.s32.totalorder %s560_s8, %s560_s8 }
  0x2b   :  { %v398_v18 = vpack.c.bf16 %v111_v16, %v109_v15  ;;  %v113_v20 = vld [vmem:[#allocation2 + $0x28] sm:$0xff]  ;;  %v115_v21 = vld [vmem:[#allocation2 + $0x38] sm:$0xff]  ;;  %v400_v22 = vpack.c.bf16 %v110_v19, %v108_v17  ;;  %v112_v24 = vld [vmem:[#allocation2 + $0x20] sm:$0xff] }
  0x2c   :  { %v402_v23 = vpack.c.bf16 %v115_v21, %v113_v20  ;;  %v114_v25 = vld [vmem:[#allocation2 + $0x30] sm:$0xff]  ;;  %v117_v26 = vld [vmem:[#allocation2 + $0x48] sm:$0xff]  ;;  %v119_v27 = vld [vmem:[#allocation2 + $0x58] sm:$0xff]  ;;  %p567_p5 = por %p566_p4, %p565_p3 }
  0x2d   :  { %52 = vmax.xlane.f32.xlu0 %v51_v10  ;;  %399 = vmatprep.subr.bf16.mxu0 %v398_v18  ;;  %v404_v28 = vpack.c.bf16 %v114_v25, %v112_v24  ;;  %v406_v29 = vpack.c.bf16 %v119_v27, %v117_v26  ;;  %v116_v30 = vld [vmem:[#allocation2 + $0x40] sm:$0xff]  ;;  %v118_v31 = vld [vmem:[#allocation2 + $0x50] sm:$0xff]  ;;  %v121_v32 = vld [vmem:[#allocation2 + $0x68] sm:$0xff] }
  0x2e   :  { %58 = vmax.xlane.f32.xlu1 %v57_v11  ;;  %401 = vmatpush1.bf16.xpose.msra.mxu0 %v400_v22  ;;  %v123_v33 = vld [vmem:[#allocation2 + $0x78] sm:$0xff]  ;;  %v408_v34 = vpack.c.bf16 %v118_v31, %v116_v30  ;;  %v293_v36 = vld [vmem:[#allocation2 + $0x208] sm:$0xff]  ;;  %v292_v39 = vld [vmem:[#allocation2 + $0x200] sm:$0xff]  ;;  %p568_p6 = pnand %p567_p5, %p561_p2 }
  0x2f   :  { %403 = vmatprep.subr.bf16.mxu0 %v402_v23  ;;  %v410_v35 = vpack.c.bf16 %v123_v33, %v121_v32  ;;  %v295_v37 = vld [vmem:[#allocation2 + $0x218] sm:$0xff]  ;;  %v294_v40 = vld [vmem:[#allocation2 + $0x210] sm:$0xff]  ;;  %v297_v42 = vld [vmem:[#allocation2 + $0x228] sm:$0xff] }
  0x30   :  { %v462_v38 = vpack.c.bf16 %v295_v37, %v293_v36  ;;  %v464_v41 = vpack.c.bf16 %v294_v40, %v292_v39  ;;  %v120_v43 = vld [vmem:[#allocation2 + $0x60] sm:$0xff]  ;;  %v122_v44 = vld [vmem:[#allocation2 + $0x70] sm:$0xff]  ;;  %v299_v45 = vld [vmem:[#allocation2 + $0x238] sm:$0xff] }
  0x31   :  { %277 = vmax.xlane.f32.xlu0 %v276_v14  ;;  %v125_v46 = vld [vmem:[#allocation2 + $0x88] sm:$0xff]  ;;  %v127_v47 = vld [vmem:[#allocation2 + $0x98] sm:$0xff]  ;;  %v466_v48 = vpack.c.bf16 %v299_v45, %v297_v42  ;;  %v296_v49 = vld [vmem:[#allocation2 + $0x220] sm:$0xff]  ;;  %v412_v51 = vpack.c.bf16 %v122_v44, %v120_v43 }
  0x32   :  { %463 = vmatprep.subr.bf16.mxu1 %v462_v38  ;;  %v298_v50 = vld [vmem:[#allocation2 + $0x230] sm:$0xff]  ;;  %v414_v52 = vpack.c.bf16 %v127_v47, %v125_v46  ;;  %v124_v54 = vld [vmem:[#allocation2 + $0x80] sm:$0xff]  ;;  %v129_v56 = vld [vmem:[#allocation2 + $0xa8] sm:$0xff] }
  0x33   :  { %465 = vmatpush1.bf16.xpose.msra.mxu1 %v464_v41  ;;  %v468_v53 = vpack.c.bf16 %v298_v50, %v296_v49  ;;  %v126_v55 = vld [vmem:[#allocation2 + $0x90] sm:$0xff]  ;;  %v131_v57 = vld [vmem:[#allocation2 + $0xb8] sm:$0xff]  ;;  %v128_v60 = vld [vmem:[#allocation2 + $0xa0] sm:$0xff] }
  0x34   :  { %467 = vmatprep.subr.bf16.mxu1 %v466_v48  ;;  %v416_v58 = vpack.c.bf16 %v126_v55, %v124_v54  ;;  %v418_v59 = vpack.c.bf16 %v131_v57, %v129_v56  ;;  %v130_v61 = vld [vmem:[#allocation2 + $0xb0] sm:$0xff]  ;;  %v133_v62 = vld [vmem:[#allocation2 + $0xc8] sm:$0xff]  ;;  %v135_v63 = vld [vmem:[#allocation2 + $0xd8] sm:$0xff] }
  0x35   :  { %v420_v3 = vpack.c.bf16 %v130_v61, %v128_v60  ;;  %v422_v7 = vpack.c.bf16 %v135_v63, %v133_v62  ;;  %v132_v10 = vld [vmem:[#allocation2 + $0xc0] sm:$0xff]  ;;  %v134_v11 = vld [vmem:[#allocation2 + $0xd0] sm:$0xff]  ;;  %v137_v14 = vld [vmem:[#allocation2 + $0xe8] sm:$0xff] }
  0x36   :  { %405 = vmatpush1.bf16.xpose.msra.mxu0 %v404_v28  ;;  %v139_v15 = vld [vmem:[#allocation2 + $0xf8] sm:$0xff]  ;;  %v424_v16 = vpack.c.bf16 %v134_v11, %v132_v10  ;;  %v136_v18 = vld [vmem:[#allocation2 + $0xe0] sm:$0xff]  ;;  %v138_v19 = vld [vmem:[#allocation2 + $0xf0] sm:$0xff] }
  0x37   :  { %407 = vmatprep.subr.bf16.mxu0 %v406_v29  ;;  %v426_v17 = vpack.c.bf16 %v139_v15, %v137_v14  ;;  %v141_v20 = vld [vmem:[#allocation2 + $0x108] sm:$0xff]  ;;  %v143_v21 = vld [vmem:[#allocation2 + $0x118] sm:$0xff]  ;;  %v428_v22 = vpack.c.bf16 %v138_v19, %v136_v18  ;;  %v140_v24 = vld [vmem:[#allocation2 + $0x100] sm:$0xff] }
  0x38   :  { %v430_v23 = vpack.c.bf16 %v143_v21, %v141_v20  ;;  %v142_v25 = vld [vmem:[#allocation2 + $0x110] sm:$0xff]  ;;  %v145_v26 = vld [vmem:[#allocation2 + $0x128] sm:$0xff]  ;;  %v147_v27 = vld [vmem:[#allocation2 + $0x138] sm:$0xff] }
  0x39   :  { %v432_v28 = vpack.c.bf16 %v142_v25, %v140_v24  ;;  %v434_v29 = vpack.c.bf16 %v147_v27, %v145_v26  ;;  %v144_v30 = vld [vmem:[#allocation2 + $0x120] sm:$0xff]  ;;  %v146_v31 = vld [vmem:[#allocation2 + $0x130] sm:$0xff]  ;;  %v149_v32 = vld [vmem:[#allocation2 + $0x148] sm:$0xff] }
  0x3a   :  { %v151_v33 = vld [vmem:[#allocation2 + $0x158] sm:$0xff]  ;;  %v148_v36 = vld [vmem:[#allocation2 + $0x140] sm:$0xff]  ;;  %v150_v37 = vld [vmem:[#allocation2 + $0x150] sm:$0xff] }
  0x3b   :  { %469 = vmatpush1.bf16.xpose.msra.mxu1 %v468_v53  ;;  %v153_v38 = vld [vmem:[#allocation2 + $0x168] sm:$0xff]  ;;  %v155_v39 = vld [vmem:[#allocation2 + $0x178] sm:$0xff]  ;;  %v440_v40 = vpack.c.bf16 %v150_v37, %v148_v36  ;;  %v152_v42 = vld [vmem:[#allocation2 + $0x160] sm:$0xff] }
  0x3c   :  { %v442_v41 = vpack.c.bf16 %v155_v39, %v153_v38  ;;  %v154_v43 = vld [vmem:[#allocation2 + $0x170] sm:$0xff]  ;;  %v157_v44 = vld [vmem:[#allocation2 + $0x188] sm:$0xff]  ;;  %v159_v45 = vld [vmem:[#allocation2 + $0x198] sm:$0xff] }
  0x3d   :  { %v444_v46 = vpack.c.bf16 %v154_v43, %v152_v42  ;;  %v446_v47 = vpack.c.bf16 %v159_v45, %v157_v44  ;;  %v156_v48 = vld [vmem:[#allocation2 + $0x180] sm:$0xff]  ;;  %v158_v49 = vld [vmem:[#allocation2 + $0x190] sm:$0xff]  ;;  %v161_v50 = vld [vmem:[#allocation2 + $0x1a8] sm:$0xff] }
  0x3e   :  { %409 = vmatpush1.bf16.xpose.msra.mxu0 %v408_v34  ;;  %v436_v34 = vpack.c.bf16 %v146_v31, %v144_v30  ;;  %v160_v55 = vld [vmem:[#allocation2 + $0x1a0] sm:$0xff]  ;;  %v162_v56 = vld [vmem:[#allocation2 + $0x1b0] sm:$0xff]  ;;  %v165_v60 = vld [vmem:[#allocation2 + $0x1c8] sm:$0xff] }
  0x3f   :  { %411 = vmatprep.subr.bf16.mxu0 %v410_v35  ;;  %v438_v35 = vpack.c.bf16 %v151_v33, %v149_v32  ;;  %v167_v61 = vld [vmem:[#allocation2 + $0x1d8] sm:$0xff]  ;;  %v452_v10 = vpack.c.bf16 %v162_v56, %v160_v55  ;;  %v166_v24 = vld [vmem:[#allocation2 + $0x1d0] sm:$0xff]  ;;  %v169_v39 = vld [vmem:[#allocation2 + $0x1e8] sm:$0xff] }
  0x40   :  { %v303_v43 = vld [vmem:[#allocation2 + $0x258] sm:$0xff]  ;;  %v168_v44 = vld [vmem:[#allocation2 + $0x1e0] sm:$0xff]  ;;  %v170_v45 = vld [vmem:[#allocation2 + $0x1f0] sm:$0xff] }
  0x41   :  { %v306_v55 = vld [vmem:[#allocation2 + $0x270] sm:$0xff] }
  0x46   :  { %413 = vmatpush1.bf16.xpose.msra.mxu0 %v412_v51  ;;  %v163_v51 = vld [vmem:[#allocation2 + $0x1b8] sm:$0xff] }
  0x47   :  { %415 = vmatprep.subr.bf16.mxu0 %v414_v52  ;;  %v448_v52 = vpack.c.bf16 %v158_v49, %v156_v48  ;;  %v450_v53 = vpack.c.bf16 %v163_v51, %v161_v50  ;;  %v300_v48 = vld [vmem:[#allocation2 + $0x240] sm:$0xff]  ;;  %v302_v49 = vld [vmem:[#allocation2 + $0x250] sm:$0xff]  ;;  %v305_v51 = vld [vmem:[#allocation2 + $0x268] sm:$0xff] }
  0x48   :  { %v472_v50 = vpack.c.bf16 %v302_v49, %v300_v48 }
  0x4e   :  { %417 = vmatpush1.bf16.xpose.msra.mxu0 %v416_v58 }
  0x4f   :  { %419 = vmatprep.subr.bf16.mxu0 %v418_v59 }
  0x56   :  { %421 = vmatpush1.bf16.xpose.msra.mxu0 %v420_v3 }
  0x57   :  { %423 = vmatprep.subr.bf16.mxu0 %v422_v7 }
  0x5e   :  { %425 = vmatpush1.bf16.xpose.msra.mxu0 %v424_v16  ;;  %v454_v16 = vpack.c.bf16 %v167_v61, %v165_v60 }
  0x5f   :  { %427 = vmatprep.subr.bf16.mxu0 %v426_v17 }
  0x66   :  { %429 = vmatpush1.bf16.xpose.msra.mxu0 %v428_v22 }
  0x67   :  { %431 = vmatprep.subr.bf16.mxu0 %v430_v23  ;;  %v164_v23 = vld [vmem:[#allocation2 + $0x1c0] sm:$0xff] }
  0x68   :  { %v456_v25 = vpack.c.bf16 %v166_v24, %v164_v23 }
  0x6e   :  { %433 = vmatpush1.bf16.xpose.msra.mxu0 %v432_v28 }
  0x6f   :  { %435 = vmatprep.subr.bf16.mxu0 %v434_v29 }
  0x76   :  { %437 = vmatpush1.bf16.xpose.msra.mxu0 %v436_v34 }
  0x77   :  { %439 = vmatprep.subr.bf16.mxu0 %v438_v35 }
  0x7e   :  { %441 = vmatpush1.bf16.xpose.msra.mxu0 %v440_v40  ;;  %v171_v40 = vld [vmem:[#allocation2 + $0x1f8] sm:$0xff] }
  0x7f   :  { %443 = vmatprep.subr.bf16.mxu0 %v442_v41  ;;  %v301_v41 = vld [vmem:[#allocation2 + $0x248] sm:$0xff]  ;;  %v458_v42 = vpack.c.bf16 %v171_v40, %v169_v39 }
  0x86   :  { %445 = vmatpush1.bf16.xpose.msra.mxu0 %v444_v46  ;;  %v470_v46 = vpack.c.bf16 %v303_v43, %v301_v41 }
  0x87   :  { %447 = vmatprep.subr.bf16.mxu0 %v446_v47  ;;  %v460_v47 = vpack.c.bf16 %v170_v45, %v168_v44 }
  0x88   :  { %471 = vmatprep.subr.bf16.mxu1 %v470_v46 }
  0x89   :  { %473 = vmatpush1.bf16.xpose.msra.mxu1 %v472_v50 }
  0x8e   :  { %449 = vmatpush1.bf16.xpose.msra.mxu0 %v448_v52  ;;  %v307_v52 = vld [vmem:[#allocation2 + $0x278] sm:$0xff] }
  0x8f   :  { %451 = vmatprep.subr.bf16.mxu0 %v450_v53  ;;  %v474_v53 = vpack.c.bf16 %v307_v52, %v305_v51 }
  0x91   :  { %475 = vmatprep.subr.bf16.mxu1 %v474_v53 }
  0x96   :  { %453 = vmatpush1.bf16.xpose.msra.mxu0 %v452_v10 }
  0x97   :  { %455 = vmatprep.subr.bf16.mxu0 %v454_v16 }
  0x9e   :  { %457 = vmatpush1.bf16.xpose.msra.mxu0 %v456_v25 }
  0x9f   :  { %459 = vmatprep.subr.bf16.mxu0 %v458_v42 }
  0xa6   :  { %461 = vmatpush1.bf16.xpose.msra.mxu0 %v460_v47 }
  0xb6   :  { %v50_v54 = vpop.xlane.xlu0 %49 }
  0xb7   :  { %v60_v57 = vsub.f32 %v635_v0, %v50_v54  ;;  %v61_v58 = vsub.f32 %v637_v1, %v50_v54  ;;  %v56_v59 = vpop.xlane.xlu1 %55  ;;  %v304_v54 = vld [vmem:[#allocation2 + $0x260] sm:$0xff] }
  0xb8   :  { %v64_v62 = vsub.f32 %v639_v2, %v56_v59  ;;  %v65_v63 = vsub.f32 %v643_v4, %v56_v59  ;;  %v476_v56 = vpack.c.bf16 %v306_v55, %v304_v54 }
  0xb9   :  { %v68_v3 = vmul.f32 1.442695, %v60_v57  ;;  %v70_v7 = vmul.f32 1.442695, %v61_v58 }
  0xba   :  { %v76_v11 = vmul.f32 1.442695, %v64_v62  ;;  %v78_v14 = vmul.f32 1.442695, %v65_v63  ;;  %v53_v15 = vpop.xlane.xlu0 %52  ;;  %477 = vmatpush1.bf16.xpose.msra.mxu1 %v476_v56 }
  0xbb   :  { %486 = vpow2.f32 %v68_v3  ;;  %v62_v17 = vsub.f32 %v645_v5, %v53_v15  ;;  %v63_v0 = vsub.f32 %v647_v6, %v53_v15  ;;  %v59_v1 = vpop.xlane.xlu1 %58 }
  0xbc   :  { %488 = vpow2.f32 %v70_v7  ;;  %v66_v18 = vsub.f32 %v651_v8, %v59_v1  ;;  %v67_v2 = vsub.f32 %v653_v9, %v59_v1 }
  0xbd   :  { %490 = vpow2.f32 %v76_v11  ;;  %v72_v4 = vmul.f32 1.442695, %v62_v17  ;;  %v74_v19 = vmul.f32 1.442695, %v63_v0 }
  0xbe   :  { %492 = vpow2.f32 %v78_v14  ;;  %v80_v20 = vmul.f32 1.442695, %v66_v18  ;;  %v82_v21 = vmul.f32 1.442695, %v67_v2  ;;  %v278_v22 = vpop.xlane.xlu0 %277 }
  0xbf   :  { %494 = vpow2.f32 %v72_v4  ;;  %v279_v5 = vsub.f32 %v659_v12, %v278_v22  ;;  %v280_v6 = vsub.f32 %v661_v13, %v278_v22 }
  0xc0   :  { %496 = vpow2.f32 %v74_v19 }
  0xc1   :  { %498 = vpow2.f32 %v80_v20  ;;  %v281_v8 = vmul.f32 1.442695, %v279_v5  ;;  %v283_v9 = vmul.f32 1.442695, %v280_v6 }
  0xc2   :  { %500 = vpow2.f32 %v82_v21 }
  0xc3   :  { %502 = vpow2.f32 %v281_v8 }
  0xc4   :  { %504 = vpow2.f32 %v283_v9 }
  0xc5   :  { %v487_v26 = vpop.eup %486 }
  0xc6   :  { %v489_v27 = vpop.eup %488 }
  0xc7   :  { %v675_v28 = vpop.eup %490  ;;  %v84_v29 = vadd.f32 %v489_v27, %v487_v26 }
  0xc8   :  { %v493_v30 = vpop.eup %492 }
  0xc9   :  { %v495_v31 = vpop.eup %494  ;;  %85 = vadd.xlane.f32.xlu1 %v84_v29  ;;  %v90_v12 = vadd.f32 %v493_v30, %v675_v28 }
  0xca   :  { %v497_v13 = vpop.eup %496 }
  0xcb   :  { %v678_v32 = vpop.eup %498  ;;  %v87_v33 = vadd.f32 %v497_v13, %v495_v31 }
  0xcc   :  { %v680_v34 = vpop.eup %500 }
  0xcd   :  { %v503_v35 = vpop.eup %502  ;;  %91 = vadd.xlane.f32.xlu1 %v90_v12  ;;  %88 = vadd.xlane.f32.xlu0 %v87_v33  ;;  %v93_v36 = vadd.f32 %v680_v34, %v678_v32 }
  0xce   :  { %v505_v37 = vpop.eup %504 }
  0xcf   :  { %v285_v38 = vadd.f32 %v505_v37, %v503_v35 }
  0xd1   :  { %94 = vadd.xlane.f32.xlu0 %v93_v36  ;;  %286 = vadd.xlane.f32.xlu1 %v285_v38 }
 0x156   :  { %v86_v57 = vpop.xlane.xlu1 %85 }
 0x157   :  { %506 = vrcp.f32 %v86_v57 }
 0x15a   :  { %v92_v58 = vpop.xlane.xlu1 %91  ;;  %v89_v59 = vpop.xlane.xlu0 %88 }
 0x15b   :  { %508 = vrcp.f32 %v92_v58 }
 0x15c   :  { %510 = vrcp.f32 %v89_v59 }
 0x15e   :  { %v287_v60 = vpop.xlane.xlu1 %286  ;;  %v95_v61 = vpop.xlane.xlu0 %94 }
 0x15f   :  { %512 = vrcp.f32 %v287_v60 }
 0x160   :  { %514 = vrcp.f32 %v95_v61 }
 0x161   :  { %v507_v62 = vpop.eup %506 }
 0x162   :  { %v101_v63 = vmul.f32 %v507_v62, %v489_v27  ;;  %v100_v3 = vmul.f32 %v507_v62, %v487_v26 }
 0x164   :  { %236 = vmatprep.mubr.f32.mxu0 %v101_v63 }
 0x165   :  { %v509_v7 = vpop.eup %508  ;;  %237 = vmatmul.mubr.f32.vlgmr.msra.gmra.mrb[0].mxu0 %v100_v3 }
 0x166   :  { %v511_v10 = vpop.eup %510  ;;  %v105_v16 = vmul.f32 %v509_v7, %v493_v30  ;;  %v104_v18 = vmul.f32 %v509_v7, %v675_v28 }
 0x167   :  { %v103_v11 = vmul.f32 %v511_v10, %v497_v13  ;;  %v102_v14 = vmul.f32 %v511_v10, %v495_v31 }
 0x169   :  { %v513_v15 = vpop.eup %512  ;;  %241 = vmatprep.mubr.f32.mxu0 %v103_v11 }
 0x16a   :  { %v515_v17 = vpop.eup %514  ;;  %242 = vmatmul.mubr.f32.gmra.mrb[2].mxu0 %v102_v14  ;;  %v290_v0 = vmul.f32 %v513_v15, %v505_v37  ;;  %v289_v1 = vmul.f32 %v513_v15, %v503_v35 }
 0x16b   :  { %246 = vmatprep.mubr.f32.mxu0 %v105_v16  ;;  %v107_v2 = vmul.f32 %v515_v17, %v680_v34  ;;  %v106_v4 = vmul.f32 %v515_v17, %v678_v32 }
 0x16c   :  { %372 = vmatprep.mubr.f32.mxu1 %v290_v0 }
 0x16d   :  { %373 = vmatmul.mubr.f32.vlgmr.msra.gmra.mrb[0].mxu1 %v289_v1 }
 0x16e   :  { %247 = vmatmul.mubr.f32.gmra.mrb[4].mxu0 %v104_v18 }
 0x16f   :  { %251 = vmatprep.mubr.f32.mxu0 %v107_v2 }
 0x172   :  { %252 = vmatmul.mubr.f32.gmra.mrb[6].mxu0 %v106_v4 }
 0x238   :  { %v238_v19 = vpop.f32.mrb[0].mxu0 }
 0x239   :  { %258 = vst.msk [vmem:[#allocation7] sm:$0xff] %vm257_vm0, %v238_v19  ;;  %v240_v20 = vpop.f32.mrb[1].mxu0 }
 0x23d   :  { %v243_v21 = vpop.f32.mrb[2].mxu0 }
 0x23e   :  { %260 = vrot.lane.b32.xlu0 %v243_v21, %s592_s1  ;;  %v245_v22 = vpop.f32.mrb[3].mxu0 }
 0x240   :  { %v374_v23 = vpop.f32.mrb[0].mxu1 }
 0x241   :  { %v248_v24 = vpop.f32.mrb[4].mxu0  ;;  %379 = vst.msk [vmem:[#allocation7 + $0x20] sm:$0xff] %vm257_vm0, %v374_v23  ;;  %v376_v5 = vpop.f32.mrb[1].mxu1 }
 0x242   :  { %v249_v6 = vpop.f32.mrb[5].mxu0 }
 0x243   :  { %266 = vst.msk [vmem:[#allocation7 + $0x10] sm:$0xff] %vm257_vm0, %v249_v6 }
 0x245   :  { %v253_v8 = vpop.f32.mrb[6].mxu0 }
 0x246   :  { %v254_v9 = vpop.f32.mrb[7].mxu0 }
 0x247   :  { %268 = vrot.lane.b32.xlu1 %v254_v9, %s592_s1 }
 0x2b0   :  { %v261_v25 = vpop.permute.xlu0 %260 }
 0x2b1   :  { %264 = vst.msk [vmem:[#allocation7 + $0x8] sm:$0xff] %vm257_vm0, %v261_v25 }
 0x2b9   :  { %v269_v26 = vpop.permute.xlu1 %268 }
 0x2ba   :  { %272 = vst.msk [vmem:[#allocation7 + $0x18] sm:$0xff] %vm257_vm0, %v269_v26 }
 0x2bb   :  { %571 = shalt.err (!%p568_p6)
}
 0x2bc   :  { %s572_s11 = scalar_lea.hbm %s706_s2, 640 }
 0x2bd   :  { %p573_p7 = scmp.ne.s32.totalorder %s706_s2, %s572_s11  ;;  %p576_p8 = scmp.lt.u32.totalorder %s572_s11, %s706_s2 }
 0x2bf   :  { %p578_p9 = pnand %p576_p8, %p573_p7 }
 0x2c1   :  { %581 = shalt.err (!%p578_p9)
}
 0x2c2   :  { %s594_s16 = smov 128   ;;  %s595_s17 = smov 8  }
 0x2c3   :  { %391 = dma.vmem_to_hbm [thread:$0]  %s386_s7, 640, %s706_s2, [#allocation4], %s594_s16, %s594_s16, %s595_s17  }
 0x2c4   :  { %586 = dma.done.wait [#allocation4], 640  }
 0x2c5   :  { %587 = vsyncadd [#allocation4], 4294966656 }
 0x2c6   :  { %395 = vsyncpa [#allocation3], 1 }
 0x2c7   :  { %396 = vsyncpa [#allocation6], 1 }
 0x2c8   :  { %397 = vsyncpa [#allocation4], 1 }

</bundles_post_ra>
